<compile_context>
chip_gen: v7x
topology: tpu7x:2x2x1
jax: 0.10.0
libtpu: 0.0.40
codegen_flags: <defaults>
</compile_context>

<pallas_src>
import functools
import math

import jax
import jax.numpy as jnp
from jax.experimental import pallas as pl
from jax.experimental.pallas import tpu as pltpu


def _round_up(v, m):
    return (v + m - 1) // m * m


def _rnn_kernel(x_ref, wih_ref, whh_ref, bias_ref, h_out_ref, xw_ref, *,
                t_chunk, seq_len):
    """One grid step = one (batch tile, time chunk). Time chunks run sequentially."""
    tc = pl.program_id(1)                                   # time-chunk index

    @pl.when(tc == 0)
    def _():
        h_out_ref[...] = jnp.zeros_like(h_out_ref)          # h_0 = zeros

    Tc, tb, I = x_ref.shape                                 # time-major x block
    H = h_out_ref.shape[-1]

    # Bulk input projection for the whole chunk: one (Tc*tb, I) x (I, H) bf16
    # MXU matmul with f32 accumulation; bias folded in once (not per step).
    # Rows are already time-major, so the store needs no transpose and the
    # per-step reads below are contiguous (tb, H) slabs.
    xw = jnp.dot(x_ref[...].reshape(Tc * tb, I), wih_ref[...],
                 preferred_element_type=jnp.float32)
    xw = xw + bias_ref[...]                                 # (1, H) broadcast, once
    xw_ref[...] = xw.reshape(Tc, tb, H).astype(xw_ref.dtype)   # bf16 staging

    whh = whh_ref[...]                                      # bf16 (H, H)
    rem = seq_len % t_chunk          # nonzero only if T was padded up in time

    def step(h_prev, xw_t):
        pre = xw_t + jnp.dot(h_prev.astype(whh.dtype), whh,
                             preferred_element_type=jnp.float32)
        return jnp.tanh(pre)

    def keep_if_padded(i, h_prev, h_new):
        # Only steps i >= rem of the last chunk can be padded timesteps; the
        # select is a guaranteed no-op on earlier chunks (low-priority to gate).
        if rem != 0 and i >= rem:
            return jnp.where(tc * t_chunk + i < seq_len, h_new, h_prev)
        return h_new

    if tb >= 16:
        # Two independent batch sub-streams -> two independent dependency
        # chains; the scheduler overlaps one stream's matmul with the other's
        # add/tanh instead of letting the MXU idle during tanh.
        half = _round_up(tb // 2, 8)
        h0 = h_out_ref[:half, :]
        h1 = h_out_ref[half:, :]
        for i in range(t_chunk):          # fully unrolled; all slices static
            n0 = step(h0, xw_ref[i, :half, :])
            n1 = step(h1, xw_ref[i, half:, :])
            h0 = keep_if_padded(i, h0, n0)
            h1 = keep_if_padded(i, h1, n1)
        h_out_ref[:half, :] = h0
        h_out_ref[half:, :] = h1
    else:
        h = h_out_ref[...]
        for i in range(t_chunk):
            h = keep_if_padded(i, h, step(h, xw_ref[i, :, :]))
        h_out_ref[...] = h


def graph_level_rnn_forward(x, w_ih, w_hh, b_ih, b_hh):
    """x: (B, T, I) batch_first; PyTorch-layout weights:
       w_ih (H, I), w_hh (H, H), b_ih (H,), b_hh (H,).
       Returns `hidden` of shape (1, B, H) in f32, matching nn.RNN's output."""
    B, T, I = x.shape
    H = w_ih.shape[0]

    if T == 0:                       # nn.RNN with empty sequence -> h_0
        return jnp.zeros((1, B, H), jnp.float32)

    # Lane-aligned padded sizes. (On v6e/v7x, 256-aligned H and 256-row tiles
    # would fill the 2x256^2 MXU better for large H; 128 is kept here since it
    # is optimal on v5e and avoids extra padded work at small H.)
    I_pad = _round_up(I, 128)
    H_pad = _round_up(H, 128)
    B_pad0 = _round_up(B, 8)

    # Batch tile: big enough to feed the MXU every recurrence step, and >=2
    # tiles whenever B allows so the "parallel" batch axis can occupy both v7x
    # TensorCores. Capped at 128 rows; B is padded to a whole number of tiles.
    if B_pad0 <= 32:
        tb = B_pad0
    elif B_pad0 <= 256:
        tb = _round_up(B_pad0 // 2, 8)
    else:
        tb = 128
    B_pad = _round_up(B_pad0, tb)

    # Time chunk: multiple of 8, capped at 32 (fully-unrolled recurrence).
    # On 128-MiB-VMEM parts (v5e/v6e) Tc can be raised to 64-128 (and the
    # unrolled loop switched to lax.fori_loop(..., unroll=8)) to cut grid
    # overhead; keep it tight on v7x's 64 MiB.
    Tc = min(_round_up(T, 8), 32)
    T_pad = _round_up(T, Tc)

    bf16 = jnp.bfloat16
    # x goes to the kernel time-major and bf16. The relayout rides the same
    # pass as the pad/cast we already do; skip the zero-pad copy entirely when
    # the shapes are already aligned.
    x_tm = jnp.transpose(x, (1, 0, 2)).astype(bf16)          # (T, B, I)
    if (T_pad, B_pad, I_pad) == (T, B, I):
        x_p = x_tm
    else:
        x_p = jnp.zeros((T_pad, B_pad, I_pad), bf16).at[:T, :B, :I].set(x_tm)

    wih_p = jnp.zeros((I_pad, H_pad), bf16).at[:I, :H].set(w_ih.T.astype(bf16))
    whh_p = jnp.zeros((H_pad, H_pad), bf16).at[:H, :H].set(w_hh.T.astype(bf16))
    bias_p = jnp.zeros((1, H_pad), jnp.float32).at[0, :H].set(
        (b_ih + b_hh).astype(jnp.float32))

    # Weights are never re-fetched across grid steps (constant index_map), so
    # when they are big enough for the saving to matter, single-buffer them.
    weight_bytes = (I_pad * H_pad + H_pad * H_pad) * 2
    single_buffer_weights = weight_bytes > (2 << 20) and hasattr(pl, "Buffered")

    def _weight_spec(shape):
        if single_buffer_weights:
            return pl.BlockSpec(shape, lambda b, t: (0, 0),
                                pipeline_mode=pl.Buffered(1))
        return pl.BlockSpec(shape, lambda b, t: (0, 0))

    # Explicit VMEM budget (defaults are only 16 MiB scoped on v5e, 32 MiB on
    # v6e/v7x): computed footprint with headroom for internal scratch.
    w_bufs = 1 if single_buffer_weights else 2
    vmem_bytes = (
        2 * Tc * tb * I_pad * 2          # x chunk (bf16, double-buffered)
        + w_bufs * I_pad * H_pad * 2     # W_ih^T (bf16)
        + w_bufs * H_pad * H_pad * 2     # W_hh^T (bf16)
        + 2 * 8 * H_pad * 4              # bias (f32, >=8 sublanes, double-buffered)
        + Tc * tb * H_pad * 2            # xw scratch (bf16, time-major)
        + 2 * tb * H_pad * 4             # hidden-state output (f32, double-buffered)
    )
    vmem_limit = int(min(max(vmem_bytes * 3 // 2 + (2 << 20), 16 << 20), 100 << 20))

    kernel = functools.partial(_rnn_kernel, t_chunk=Tc, seq_len=T)

    h_last = pl.pallas_call(
        kernel,
        out_shape=jax.ShapeDtypeStruct((B_pad, H_pad), jnp.float32),
        grid_spec=pltpu.PrefetchScalarGridSpec(
            num_scalar_prefetch=0,
            grid=(B_pad // tb, T_pad // Tc),          # (batch tiles, time chunks)
            in_specs=[
                pl.BlockSpec((Tc, tb, I_pad), lambda b, t: (t, b, 0)),  # x (time-major)
                _weight_spec((I_pad, H_pad)),                            # W_ih^T
                _weight_spec((H_pad, H_pad)),                            # W_hh^T
                pl.BlockSpec((1, H_pad), lambda b, t: (0, 0)),           # bias
            ],
            # Output block indexed by batch tile only -> stays VMEM-resident
            # across the (sequential) time axis and carries the hidden state.
            out_specs=pl.BlockSpec((tb, H_pad), lambda b, t: (b, 0)),
            scratch_shapes=[pltpu.VMEM((Tc, tb, H_pad), jnp.bfloat16)],  # x@W_ih^T+b
        ),
        compiler_params=pltpu.CompilerParams(
            # Batch tiles are independent (megacore split on v7x); time is the
            # sequential recurrence.
            dimension_semantics=("parallel", "arbitrary"),
            vmem_limit_bytes=vmem_limit,
        ),
    )(x_p, wih_p, whh_p, bias_p)

    return h_last[:B, :H][None, :, :]   # (num_layers=1, B, H)


def _reference_rnn(x, w_ih, w_hh, b_ih, b_hh):
    B, T, _ = x.shape
    H = w_ih.shape[0]
    h = jnp.zeros((B, H), jnp.float32)
    for t in range(T):
        h = jnp.tanh(x[:, t, :] @ w_ih.T + b_ih + h @ w_hh.T + b_hh)
    return h[None]


def _make_inputs(key, B, T, I, H):
    k_x, k_wih, k_whh, k_bih, k_bhh = jax.random.split(key, 5)
    bound = 1.0 / math.sqrt(H)   # mimics PyTorch's uniform(-1/sqrt(H), 1/sqrt(H))
    x = jax.random.normal(k_x, (B, T, I), dtype=jnp.float32)
    w_ih = jax.random.uniform(k_wih, (H, I), minval=-bound, maxval=bound)
    w_hh = jax.random.uniform(k_whh, (H, H), minval=-bound, maxval=bound)
    b_ih = jax.random.uniform(k_bih, (H,), minval=-bound, maxval=bound)
    b_hh = jax.random.uniform(k_bhh, (H,), minval=-bound, maxval=bound)
    return x, w_ih, w_hh, b_ih, b_hh


if __name__ == "__main__":
    key0, key1 = jax.random.split(jax.random.PRNGKey(0))

    # Primary small config consistent with the module: batch=2, seq=8,
    # input_size=16, hidden_size=32 (output_size is effectively nn.RNN's
    # `bias` positional in the original ctor, so biases are enabled).
    args = _make_inputs(key0, B=2, T=8, I=16, H=32)
    hidden = jax.block_until_ready(graph_level_rnn_forward(*args))
    ref = _reference_rnn(*args)
    assert hidden.shape == (1, 2, 32), hidden.shape
    # bf16 MXU operands + bf16 staging of the input projection: the recurrence
    # compounds rounding over T steps, so the tolerance is deliberately loose.
    assert jnp.allclose(hidden, ref, atol=1e-1, rtol=5e-2), "mismatch (small cfg)"

    # Second config exercising multiple batch tiles, the interleaved two-stream
    # recurrence, and time/feature padding plus tail-timestep masking.
    args2 = _make_inputs(key1, B=40, T=13, I=20, H=40)
    hidden2 = jax.block_until_ready(graph_level_rnn_forward(*args2))
    ref2 = _reference_rnn(*args2)
    assert hidden2.shape == (1, 40, 40), hidden2.shape
    assert jnp.allclose(hidden2, ref2, atol=1e-1, rtol=5e-2), "mismatch (padded cfg)"

    print("KERNEL_OK")
</pallas_src>

<mosaic_0001>
module attributes {stable_mosaic.version = 11 : i64} {
  func.func @_rnn_kernel(%arg0: i32, %arg1: i32, %arg2: memref<8x8x128xbf16, #tpu.memory_space<vmem>>, %arg3: memref<128x128xbf16, #tpu.memory_space<vmem>>, %arg4: memref<128x128xbf16, #tpu.memory_space<vmem>>, %arg5: memref<1x128xf32, #tpu.memory_space<vmem>>, %arg6: memref<8x128xf32, #tpu.memory_space<vmem>>, %arg7: memref<8x8x128xbf16, #tpu.memory_space<vmem>>) attributes {dimension_semantics = [#tpu.dimension_semantics<parallel>, #tpu.dimension_semantics<arbitrary>], iteration_bounds = array<i64: 1, 1>, scalar_prefetch = 0 : i64, scratch_operands = 1 : i64, tpu.core_type = #tpu.core_type<tc>, window_params = [{transform_indices = @transform_0, window_bounds = array<i64: 8, 8, 128>}, {pipeline_mode = #tpu.pipeline_mode<synchronous>, transform_indices = @transform_1, window_bounds = array<i64: 128, 128>}, {pipeline_mode = #tpu.pipeline_mode<synchronous>, transform_indices = @transform_2, window_bounds = array<i64: 128, 128>}, {pipeline_mode = #tpu.pipeline_mode<synchronous>, transform_indices = @transform_3, window_bounds = array<i64: 1, 128>}, {transform_indices = @transform_4, window_bounds = array<i64: 8, 128>}]} {
    %c0_i32 = arith.constant 0 : i32
    %0 = arith.cmpi eq, %arg1, %c0_i32 : i32
    %1 = arith.extui %0 : i1 to i32
    %c0_i32_0 = arith.constant 0 : i32
    %2 = arith.cmpi ne, %1, %c0_i32_0 : i32
    scf.if %2 {
      %cst_41 = arith.constant 0.000000e+00 : f32
      %72 = vector.broadcast %cst_41 : f32 to vector<8x128xf32>
      %c0_42 = arith.constant 0 : index
      %c0_43 = arith.constant 0 : index
      %73 = vector.load %arg6[%c0_42, %c0_43] : memref<8x128xf32, #tpu.memory_space<vmem>>, vector<8x128xf32>
      tpu.vector_store %arg6[%c0_42, %c0_43], %72 {strides = array<i32>} : memref<8x128xf32, #tpu.memory_space<vmem>>, vector<8x128xf32>,
    } else {
    }
    %c0 = arith.constant 0 : index
    %c0_1 = arith.constant 0 : index
    %c0_2 = arith.constant 0 : index
    %3 = vector.load %arg2[%c0, %c0_1, %c0_2] : memref<8x8x128xbf16, #tpu.memory_space<vmem>>, vector<8x8x128xbf16>
    %4 = vector.shape_cast %3 : vector<8x8x128xbf16> to vector<64x128xbf16>
    %c0_3 = arith.constant 0 : index
    %c0_4 = arith.constant 0 : index
    %5 = vector.load %arg3[%c0_3, %c0_4] : memref<128x128xbf16, #tpu.memory_space<vmem>>, vector<128x128xbf16>
    %cst = arith.constant dense<0.000000e+00> : vector<64x128xf32>
    %6 = tpu.matmul %4, %5, %cst {dimension_numbers = #tpu.dot_dimension_numbers<[1], [0], [0], [1], [0, 0, 1, 1], [], []>} : vector<64x128xbf16>, vector<128x128xbf16>, vector<64x128xf32> -> vector<64x128xf32>
    %c0_5 = arith.constant 0 : index
    %c0_6 = arith.constant 0 : index
    %7 = vector.load %arg5[%c0_5, %c0_6] : memref<1x128xf32, #tpu.memory_space<vmem>>, vector<1x128xf32>
    %8 = vector.broadcast %7 : vector<1x128xf32> to vector<64x128xf32>
    %9 = arith.addf %6, %8 : vector<64x128xf32>
    %10 = vector.shape_cast %9 : vector<64x128xf32> to vector<8x8x128xf32>
    %11 = arith.truncf %10 : vector<8x8x128xf32> to vector<8x8x128xbf16>
    %c0_7 = arith.constant 0 : index
    %c0_8 = arith.constant 0 : index
    %c0_9 = arith.constant 0 : index
    %12 = vector.load %arg7[%c0_7, %c0_8, %c0_9] : memref<8x8x128xbf16, #tpu.memory_space<vmem>>, vector<8x8x128xbf16>
    tpu.vector_store %arg7[%c0_7, %c0_8, %c0_9], %11 {strides = array<i32>} : memref<8x8x128xbf16, #tpu.memory_space<vmem>>, vector<8x8x128xbf16>,
    %c0_10 = arith.constant 0 : index
    %c0_11 = arith.constant 0 : index
    %13 = vector.load %arg4[%c0_10, %c0_11] : memref<128x128xbf16, #tpu.memory_space<vmem>>, vector<128x128xbf16>
    %c0_12 = arith.constant 0 : index
    %c0_13 = arith.constant 0 : index
    %14 = vector.load %arg6[%c0_12, %c0_13] : memref<8x128xf32, #tpu.memory_space<vmem>>, vector<8x128xf32>
    %c0_14 = arith.constant 0 : index
    %c0_15 = arith.constant 0 : index
    %c0_16 = arith.constant 0 : index
    %15 = vector.load %arg7[%c0_14, %c0_15, %c0_16] : memref<8x8x128xbf16, #tpu.memory_space<vmem>>, vector<1x8x128xbf16>
    %16 = vector.shape_cast %15 : vector<1x8x128xbf16> to vector<8x128xbf16>
    %17 = arith.truncf %14 : vector<8x128xf32> to vector<8x128xbf16>
    %cst_17 = arith.constant dense<0.000000e+00> : vector<8x128xf32>
    %18 = tpu.matmul %17, %13, %cst_17 {dimension_numbers = #tpu.dot_dimension_numbers<[1], [0], [0], [1], [0, 0, 1, 1], [], []>} : vector<8x128xbf16>, vector<128x128xbf16>, vector<8x128xf32> -> vector<8x128xf32>
    %19 = arith.extf %16 : vector<8x128xbf16> to vector<8x128xf32>
    %20 = arith.addf %19, %18 : vector<8x128xf32>
    %21 = math.tanh %20 : vector<8x128xf32>
    %c1 = arith.constant 1 : index
    %c0_18 = arith.constant 0 : index
    %c0_19 = arith.constant 0 : index
    %22 = vector.load %arg7[%c1, %c0_18, %c0_19] : memref<8x8x128xbf16, #tpu.memory_space<vmem>>, vector<1x8x128xbf16>
    %23 = vector.shape_cast %22 : vector<1x8x128xbf16> to vector<8x128xbf16>
    %24 = arith.truncf %21 : vector<8x128xf32> to vector<8x128xbf16>
    %cst_20 = arith.constant dense<0.000000e+00> : vector<8x128xf32>
    %25 = tpu.matmul %24, %13, %cst_20 {dimension_numbers = #tpu.dot_dimension_numbers<[1], [0], [0], [1], [0, 0, 1, 1], [], []>} : vector<8x128xbf16>, vector<128x128xbf16>, vector<8x128xf32> -> vector<8x128xf32>
    %26 = arith.extf %23 : vector<8x128xbf16> to vector<8x128xf32>
    %27 = arith.addf %26, %25 : vector<8x128xf32>
    %28 = math.tanh %27 : vector<8x128xf32>
    %c2 = arith.constant 2 : index
    %c0_21 = arith.constant 0 : index
    %c0_22 = arith.constant 0 : index
    %29 = vector.load %arg7[%c2, %c0_21, %c0_22] : memref<8x8x128xbf16, #tpu.memory_space<vmem>>, vector<1x8x128xbf16>
    %30 = vector.shape_cast %29 : vector<1x8x128xbf16> to vector<8x128xbf16>
    %31 = arith.truncf %28 : vector<8x128xf32> to vector<8x128xbf16>
    %cst_23 = arith.constant dense<0.000000e+00> : vector<8x128xf32>
    %32 = tpu.matmul %31, %13, %cst_23 {dimension_numbers = #tpu.dot_dimension_numbers<[1], [0], [0], [1], [0, 0, 1, 1], [], []>} : vector<8x128xbf16>, vector<128x128xbf16>, vector<8x128xf32> -> vector<8x128xf32>
    %33 = arith.extf %30 : vector<8x128xbf16> to vector<8x128xf32>
    %34 = arith.addf %33, %32 : vector<8x128xf32>
    %35 = math.tanh %34 : vector<8x128xf32>
    %c3 = arith.constant 3 : index
    %c0_24 = arith.constant 0 : index
    %c0_25 = arith.constant 0 : index
    %36 = vector.load %arg7[%c3, %c0_24, %c0_25] : memref<8x8x128xbf16, #tpu.memory_space<vmem>>, vector<1x8x128xbf16>
    %37 = vector.shape_cast %36 : vector<1x8x128xbf16> to vector<8x128xbf16>
    %38 = arith.truncf %35 : vector<8x128xf32> to vector<8x128xbf16>
    %cst_26 = arith.constant dense<0.000000e+00> : vector<8x128xf32>
    %39 = tpu.matmul %38, %13, %cst_26 {dimension_numbers = #tpu.dot_dimension_numbers<[1], [0], [0], [1], [0, 0, 1, 1], [], []>} : vector<8x128xbf16>, vector<128x128xbf16>, vector<8x128xf32> -> vector<8x128xf32>
    %40 = arith.extf %37 : vector<8x128xbf16> to vector<8x128xf32>
    %41 = arith.addf %40, %39 : vector<8x128xf32>
    %42 = math.tanh %41 : vector<8x128xf32>
    %c4 = arith.constant 4 : index
    %c0_27 = arith.constant 0 : index
    %c0_28 = arith.constant 0 : index
    %43 = vector.load %arg7[%c4, %c0_27, %c0_28] : memref<8x8x128xbf16, #tpu.memory_space<vmem>>, vector<1x8x128xbf16>
    %44 = vector.shape_cast %43 : vector<1x8x128xbf16> to vector<8x128xbf16>
    %45 = arith.truncf %42 : vector<8x128xf32> to vector<8x128xbf16>
    %cst_29 = arith.constant dense<0.000000e+00> : vector<8x128xf32>
    %46 = tpu.matmul %45, %13, %cst_29 {dimension_numbers = #tpu.dot_dimension_numbers<[1], [0], [0], [1], [0, 0, 1, 1], [], []>} : vector<8x128xbf16>, vector<128x128xbf16>, vector<8x128xf32> -> vector<8x128xf32>
    %47 = arith.extf %44 : vector<8x128xbf16> to vector<8x128xf32>
    %48 = arith.addf %47, %46 : vector<8x128xf32>
    %49 = math.tanh %48 : vector<8x128xf32>
    %c5 = arith.constant 5 : index
    %c0_30 = arith.constant 0 : index
    %c0_31 = arith.constant 0 : index
    %50 = vector.load %arg7[%c5, %c0_30, %c0_31] : memref<8x8x128xbf16, #tpu.memory_space<vmem>>, vector<1x8x128xbf16>
    %51 = vector.shape_cast %50 : vector<1x8x128xbf16> to vector<8x128xbf16>
    %52 = arith.truncf %49 : vector<8x128xf32> to vector<8x128xbf16>
    %cst_32 = arith.constant dense<0.000000e+00> : vector<8x128xf32>
    %53 = tpu.matmul %52, %13, %cst_32 {dimension_numbers = #tpu.dot_dimension_numbers<[1], [0], [0], [1], [0, 0, 1, 1], [], []>} : vector<8x128xbf16>, vector<128x128xbf16>, vector<8x128xf32> -> vector<8x128xf32>
    %54 = arith.extf %51 : vector<8x128xbf16> to vector<8x128xf32>
    %55 = arith.addf %54, %53 : vector<8x128xf32>
    %56 = math.tanh %55 : vector<8x128xf32>
    %c6 = arith.constant 6 : index
    %c0_33 = arith.constant 0 : index
    %c0_34 = arith.constant 0 : index
    %57 = vector.load %arg7[%c6, %c0_33, %c0_34] : memref<8x8x128xbf16, #tpu.memory_space<vmem>>, vector<1x8x128xbf16>
    %58 = vector.shape_cast %57 : vector<1x8x128xbf16> to vector<8x128xbf16>
    %59 = arith.truncf %56 : vector<8x128xf32> to vector<8x128xbf16>
    %cst_35 = arith.constant dense<0.000000e+00> : vector<8x128xf32>
    %60 = tpu.matmul %59, %13, %cst_35 {dimension_numbers = #tpu.dot_dimension_numbers<[1], [0], [0], [1], [0, 0, 1, 1], [], []>} : vector<8x128xbf16>, vector<128x128xbf16>, vector<8x128xf32> -> vector<8x128xf32>
    %61 = arith.extf %58 : vector<8x128xbf16> to vector<8x128xf32>
    %62 = arith.addf %61, %60 : vector<8x128xf32>
    %63 = math.tanh %62 : vector<8x128xf32>
    %c7 = arith.constant 7 : index
    %c0_36 = arith.constant 0 : index
    %c0_37 = arith.constant 0 : index
    %64 = vector.load %arg7[%c7, %c0_36, %c0_37] : memref<8x8x128xbf16, #tpu.memory_space<vmem>>, vector<1x8x128xbf16>
    %65 = vector.shape_cast %64 : vector<1x8x128xbf16> to vector<8x128xbf16>
    %66 = arith.truncf %63 : vector<8x128xf32> to vector<8x128xbf16>
    %cst_38 = arith.constant dense<0.000000e+00> : vector<8x128xf32>
    %67 = tpu.matmul %66, %13, %cst_38 {dimension_numbers = #tpu.dot_dimension_numbers<[1], [0], [0], [1], [0, 0, 1, 1], [], []>} : vector<8x128xbf16>, vector<128x128xbf16>, vector<8x128xf32> -> vector<8x128xf32>
    %68 = arith.extf %65 : vector<8x128xbf16> to vector<8x128xf32>
    %69 = arith.addf %68, %67 : vector<8x128xf32>
    %70 = math.tanh %69 : vector<8x128xf32>
    %c0_39 = arith.constant 0 : index
    %c0_40 = arith.constant 0 : index
    %71 = vector.load %arg6[%c0_39, %c0_40] : memref<8x128xf32, #tpu.memory_space<vmem>>, vector<8x128xf32>
    tpu.vector_store %arg6[%c0_39, %c0_40], %70 {strides = array<i32>} : memref<8x128xf32, #tpu.memory_space<vmem>>, vector<8x128xf32>,
    return
  }
  func.func @transform_0(%arg0: i32, %arg1: i32) -> (i32, i32, i32) {
    %c0_i32 = arith.constant 0 : i32
    %c0_i32_0 = arith.constant 0 : i32
    return %arg1, %arg0, %c0_i32 : i32, i32, i32
  }
  func.func @transform_1(%arg0: i32, %arg1: i32) -> (i32, i32) {
    %c0_i32 = arith.constant 0 : i32
    %c0_i32_0 = arith.constant 0 : i32
    %c0_i32_1 = arith.constant 0 : i32
    return %c0_i32, %c0_i32_0 : i32, i32
  }
  func.func @transform_2(%arg0: i32, %arg1: i32) -> (i32, i32) {
    %c0_i32 = arith.constant 0 : i32
    %c0_i32_0 = arith.constant 0 : i32
    %c0_i32_1 = arith.constant 0 : i32
    return %c0_i32, %c0_i32_0 : i32, i32
  }
  func.func @transform_3(%arg0: i32, %arg1: i32) -> (i32, i32) {
    %c0_i32 = arith.constant 0 : i32
    %c0_i32_0 = arith.constant 0 : i32
    %c0_i32_1 = arith.constant 0 : i32
    return %c0_i32, %c0_i32_0 : i32, i32
  }
  func.func @transform_4(%arg0: i32, %arg1: i32) -> (i32, i32) {
    %c0_i32 = arith.constant 0 : i32
    %c0_i32_0 = arith.constant 0 : i32
    return %arg0, %c0_i32 : i32, i32
  }
}

</mosaic_0001>

<bundles_post_ra>
// kernel: tpu_custom_call.1
= control target key start
LH: loop header
LB: loop body
LE: loop exit
PB: predicated region body
PF: predicated region fallthrough
CT: control target
= control target key end

     0   :  { %9 = vsyncpa [#allocation4], 0  ;;  %s1409_s0 = inlined_call_operand.hbm [shape: bf16[8,8,128], index: 0, kind: input, shape index: {}]   ;;  %s1410_s1 = inlined_call_operand.hbm [shape: bf16[128,128], index: 1, kind: input, shape index: {}]   ;;  %s1411_s2 = inlined_call_operand.hbm [shape: bf16[128,128], index: 2, kind: input, shape index: {}]   ;;  %s1412_s3 = inlined_call_operand.vmem [shape: f32[1,128], index: 3, kind: input, shape index: {}]   ;;  %s1413_s4 = inlined_call_operand.hbm [shape: f32[8,128], index: 4, kind: output, shape index: {}]  }
   0x1   :  { %10 = vsyncpa [#allocation7], 0 }
   0x2   :  { %11 = vsyncpa [#allocation5], 0  ;;  %s1148_s15 = smov [#allocation6]   ;;  %s1149_s17 = smov [#allocation3]  }
   0x3   :  { %s29_s16 = sshll.u32 %s1148_s15, 4  ;;  %s17_s18 = sshll.u32 %s1149_s17, 4  ;;  %s30_s16 = int_to_ptr.vmem [resolvable:$true] %s29_s16  ;;  %s1182_s18 = int_to_ptr.vmem [resolvable:$true] %s17_s18 }
   0x4   :  { %s1054_s21 = scalar_lea.hbm %s1410_s1, 1024 }
   0x5   :  { %p1055_p0 = scmp.ne.s32.totalorder %s1410_s1, %s1054_s21  ;;  %p1058_p1 = scmp.lt.u32.totalorder %s1054_s21, %s1410_s1 }
   0x7   :  { %p1060_p2 = pnand %p1058_p1, %p1055_p0 }
   0x9   :  { %1063 = shalt.err (!%p1060_p2)
}
   0xa   :  { %s1064_s26 = scalar_lea.vmem %s30_s16, 1024  ;;  %p1069_p4 = scmp.lt.s32.totalorder %s30_s16, %s30_s16 }
   0xb   :  { %p1065_p3 = scmp.ne.s32.totalorder %s30_s16, %s1064_s26  ;;  %p1070_p5 = scmp.lt.s32.totalorder %s1064_s26, %s1064_s26 }
   0xd   :  { %p1071_p6 = por %p1070_p5, %p1069_p4 }
   0xf   :  { %p1072_p7 = pnand %p1071_p6, %p1065_p3 }
  0x11   :  { %1075 = shalt.err (!%p1072_p7)
}
  0x12   :  { %s1150_s27 = smov 64   ;;  %s1151_s28 = smov 4  }
  0x13   :  { %35 = dma.hbm_to_vmem [thread:$0]  %s1410_s1, 1024, %s30_s16, [#allocation7], %s1150_s27, %s1150_s27, %s1151_s28  }
  0x14   :  { %s1076_s7 = scalar_lea.hbm %s1409_s0, 512 }
  0x15   :  { %p1077_p8 = scmp.ne.s32.totalorder %s1409_s0, %s1076_s7  ;;  %p1080_p9 = scmp.lt.u32.totalorder %s1076_s7, %s1409_s0 }
  0x17   :  { %p1082_p10 = pnand %p1080_p9, %p1077_p8 }
  0x19   :  { %1085 = shalt.err (!%p1082_p10)
}
  0x1a   :  { %s1086_s12 = scalar_lea.vmem %s1182_s18, 512  ;;  %p1091_p12 = scmp.lt.s32.totalorder %s1182_s18, %s1182_s18 }
  0x1b   :  { %p1087_p11 = scmp.ne.s32.totalorder %s1182_s18, %s1086_s12  ;;  %p1092_p13 = scmp.lt.s32.totalorder %s1086_s12, %s1086_s12 }
  0x1d   :  { %p1093_p0 = por %p1092_p13, %p1091_p12 }
  0x1f   :  { %p1094_p1 = pnand %p1093_p0, %p1087_p11 }
  0x21   :  { %1097 = shalt.err (!%p1094_p1)
}
  0x22   :  { %23 = dma.hbm_to_vmem [thread:$0]  %s1409_s0, 512, %s1182_s18, [#allocation4], %s1150_s27, %s1150_s27, %s1151_s28  }
  0x23   :  { %s1152_s14 = smov [#allocation8]   ;;  %s1098_s19 = scalar_lea.hbm %s1411_s2, 1024 }
  0x24   :  { %s41_s15 = sshll.u32 %s1152_s14, 4  ;;  %p1099_p2 = scmp.ne.s32.totalorder %s1411_s2, %s1098_s19  ;;  %s42_s15 = int_to_ptr.vmem [resolvable:$true] %s41_s15 }
  0x25   :  { %p1102_p3 = scmp.lt.u32.totalorder %s1098_s19, %s1411_s2 }
  0x27   :  { %p1104_p4 = pnand %p1102_p3, %p1099_p2 }
  0x29   :  { %1107 = shalt.err (!%p1104_p4)
}
  0x2a   :  { %s1108_s24 = scalar_lea.vmem %s42_s15, 1024  ;;  %p1113_p6 = scmp.lt.s32.totalorder %s42_s15, %s42_s15 }
  0x2b   :  { %p1109_p5 = scmp.ne.s32.totalorder %s42_s15, %s1108_s24  ;;  %p1114_p7 = scmp.lt.s32.totalorder %s1108_s24, %s1108_s24 }
  0x2d   :  { %p1115_p8 = por %p1114_p7, %p1113_p6 }
  0x2f   :  { %p1116_p9 = pnand %p1115_p8, %p1109_p5 }
  0x31   :  { %1119 = shalt.err (!%p1116_p9)
}
  0x32   :  { %47 = dma.hbm_to_vmem [thread:$0]  %s1411_s2, 1024, %s42_s15, [#allocation7], %s1150_s27, %s1150_s27, %s1151_s28  }
  0x33   :  { %1142 = dma.done.wait [#allocation4], 512  }
  0x34   :  { %1143 = vsyncadd [#allocation4], 4294966784 }
  0x35   :  { %1144 = dma.done.wait [#allocation7], 2048  }
  0x36   :  { %1145 = vsyncadd [#allocation7], 4294965248  ;;  %v1153_v0 = vmov 0.0   ;;  %vm1154_vm0 = vmmov 0   ;;  %v1018_v1 = vld [vmem:[#allocation6] sm:$0xff]   ;;  %v1019_v2 = vld [vmem:[#allocation6 + $0x8] sm:$0xff]  }
  0x37   :  { %850 = vmatprep.subr.bf16.mxu1 %v1153_v0  ;;  %866 = vmatprep.mubr.msk.bf16.mxu1 %vm1154_vm0, %v1153_v0  ;;  %v1020_v3 = vld [vmem:[#allocation6 + $0x10] sm:$0xff]   ;;  %v1237_v4 = vld [vmem:[#allocation8] sm:$0xff]   ;;  %v1240_v5 = vld [vmem:[#allocation8 + $0x8] sm:$0xff]   ;;  %v1155_v19 = vmov 0.0|0.0  }
  0x38   :  { %826 = vmatprep.subr.bf16.mxu0 %v1018_v1  ;;  %851 = vmatpush3.bf16.msra.mxu1 %v1237_v4  ;;  %v1021_v6 = vld [vmem:[#allocation6 + $0x18] sm:$0xff]   ;;  %v1244_v7 = vld [vmem:[#allocation8 + $0x10] sm:$0xff]   ;;  %v1023_v8 = vld [vmem:[#allocation6 + $0x20] sm:$0xff]  }
  0x39   :  { %827 = vmatpush3.bf16.msra.mxu0 %v1018_v1  ;;  %852 = vmatprep.subr.bf16.mxu1 %v1153_v0  ;;  %v1030_v9 = vld [vmem:[#allocation3] sm:$0xff]   ;;  %v1248_v10 = vld [vmem:[#allocation8 + $0x18] sm:$0xff]   ;;  %v1025_v11 = vld [vmem:[#allocation6 + $0x28] sm:$0xff]  }
  0x3a   :  { %828 = vmatprep.subr.bf16.mxu0 %v1019_v2  ;;  %842 = vmatprep.mubr.bf16.mxu0 %v1030_v9  ;;  %v1251_v12 = vld [vmem:[#allocation8 + $0x20] sm:$0xff]   ;;  %v1027_v13 = vld [vmem:[#allocation6 + $0x30] sm:$0xff]   ;;  %v1256_v14 = vld [vmem:[#allocation8 + $0x28] sm:$0xff]  }
  0x3b   :  { %v1029_v15 = vld [vmem:[#allocation6 + $0x38] sm:$0xff]   ;;  %v1260_v16 = vld [vmem:[#allocation8 + $0x30] sm:$0xff]   ;;  %v1032_v17 = vld [vmem:[#allocation3 + $0x8] sm:$0xff]  }
  0x3c   :  { %853 = vmatpush3.bf16.msra.mxu1 %v1240_v5  ;;  %v1264_v18 = vld [vmem:[#allocation8 + $0x38] sm:$0xff]   ;;  %v1036_v20 = vld [vmem:[#allocation3 + $0x10] sm:$0xff]   ;;  %v698_v23 = vld [vmem:[%s1412_s3] ss:$0 sm:$0xff]  ;;  %s1156_s3 = smov [#allocation9]  }
  0x3d   :  { %829 = vmatpush3.bf16.msra.mxu0 %v1019_v2  ;;  %854 = vmatprep.subr.bf16.mxu1 %v1153_v0  ;;  %v1037_v21 = vld [vmem:[#allocation3 + $0x18] sm:$0xff]   ;;  %s688_s26 = sshll.u32 %s1156_s3, 4  ;;  %s689_s26 = int_to_ptr.vmem [resolvable:$true] %s688_s26 }
  0x3e   :  { %830 = vmatprep.subr.bf16.mxu0 %v1020_v3  ;;  %s1120_s27 = scalar_lea.vmem %s689_s26, 128  ;;  %p1125_p11 = scmp.lt.s32.totalorder %s689_s26, %s689_s26 }
  0x3f   :  { %p1121_p10 = scmp.ne.s32.totalorder %s689_s26, %s1120_s27  ;;  %p1126_p12 = scmp.lt.s32.totalorder %s1120_s27, %s1120_s27 }
  0x40   :  { %855 = vmatpush3.bf16.msra.mxu1 %v1244_v7 }
  0x41   :  { %831 = vmatpush3.bf16.msra.mxu0 %v1020_v3  ;;  %856 = vmatprep.subr.bf16.mxu1 %v1153_v0  ;;  %p1127_p13 = por %p1126_p12, %p1125_p11 }
  0x42   :  { %832 = vmatprep.subr.bf16.mxu0 %v1021_v6 }
  0x43   :  { %p1128_p0 = pnand %p1127_p13, %p1121_p10 }
  0x44   :  { %857 = vmatpush3.bf16.msra.mxu1 %v1248_v10 }
  0x45   :  { %833 = vmatpush3.bf16.msra.mxu0 %v1021_v6  ;;  %858 = vmatprep.subr.bf16.mxu1 %v1153_v0 }
  0x46   :  { %834 = vmatprep.subr.bf16.mxu0 %v1023_v8 }
  0x48   :  { %859 = vmatpush3.bf16.msra.mxu1 %v1251_v12 }
  0x49   :  { %835 = vmatpush3.bf16.msra.mxu0 %v1023_v8  ;;  %860 = vmatprep.subr.bf16.mxu1 %v1153_v0 }
  0x4a   :  { %836 = vmatprep.subr.bf16.mxu0 %v1025_v11 }
  0x4c   :  { %861 = vmatpush3.bf16.msra.mxu1 %v1256_v14 }
  0x4d   :  { %837 = vmatpush3.bf16.msra.mxu0 %v1025_v11  ;;  %862 = vmatprep.subr.bf16.mxu1 %v1153_v0 }
  0x4e   :  { %838 = vmatprep.subr.bf16.mxu0 %v1027_v13 }
  0x50   :  { %863 = vmatpush3.bf16.msra.mxu1 %v1260_v16 }
  0x51   :  { %839 = vmatpush3.bf16.msra.mxu0 %v1027_v13  ;;  %864 = vmatprep.subr.bf16.mxu1 %v1153_v0 }
  0x52   :  { %840 = vmatprep.subr.bf16.mxu0 %v1029_v15 }
  0x54   :  { %865 = vmatpush3.bf16.msra.mxu1 %v1264_v18 }
  0x55   :  { %841 = vmatpush3.bf16.msra.mxu0 %v1029_v15  ;;  %890 = vmatprep.subr.bf16.mxu1 %v1153_v0 }
  0x56   :  { %870 = vmatprep.subr.bf16.mxu0 %v1153_v0 }
  0x57   :  { %867 = vmatmul.mubr.bf16.vlgmr.msra.gmra.mrb[0].mxu1 %v1155_v19 }
  0x58   :  { %843 = vmatmul.mubr.bf16.vlgmr.msra.gmra.mrb[0].mxu0 %v1032_v17  ;;  %891 = vmatpush3.bf16.msra.mxu1 %v1237_v4 }
  0x59   :  { %871 = vmatpush3.bf16.msra.mxu0 %v1237_v4  ;;  %906 = vmatprep.mubr.msk.bf16.mxu1 %vm1154_vm0, %v1153_v0 }
  0x5a   :  { %872 = vmatprep.subr.bf16.mxu0 %v1153_v0  ;;  %892 = vmatprep.subr.bf16.mxu1 %v1153_v0 }
  0x5b   :  { %846 = vmatprep.mubr.bf16.mxu0 %v1036_v20 }
  0x5c   :  { %893 = vmatpush3.bf16.msra.mxu1 %v1240_v5 }
  0x5d   :  { %873 = vmatpush3.bf16.msra.mxu0 %v1240_v5  ;;  %894 = vmatprep.subr.bf16.mxu1 %v1153_v0 }
  0x5e   :  { %874 = vmatprep.subr.bf16.mxu0 %v1153_v0 }
  0x60   :  { %895 = vmatpush3.bf16.msra.mxu1 %v1244_v7  ;;  %847 = vmatmul.mubr.bf16.gmra.mrb[4].mxu0 %v1037_v21 }
  0x61   :  { %875 = vmatpush3.bf16.msra.mxu0 %v1244_v7  ;;  %896 = vmatprep.subr.bf16.mxu1 %v1153_v0 }
  0x62   :  { %876 = vmatprep.subr.bf16.mxu0 %v1153_v0  ;;  %886 = vmatprep.mubr.msk.bf16.mxu0 %vm1154_vm0, %v1153_v0 }
  0x64   :  { %897 = vmatpush3.bf16.msra.mxu1 %v1248_v10 }
  0x65   :  { %877 = vmatpush3.bf16.msra.mxu0 %v1248_v10  ;;  %898 = vmatprep.subr.bf16.mxu1 %v1153_v0 }
  0x66   :  { %878 = vmatprep.subr.bf16.mxu0 %v1153_v0 }
  0x68   :  { %899 = vmatpush3.bf16.msra.mxu1 %v1251_v12 }
  0x69   :  { %879 = vmatpush3.bf16.msra.mxu0 %v1251_v12  ;;  %900 = vmatprep.subr.bf16.mxu1 %v1153_v0 }
  0x6a   :  { %880 = vmatprep.subr.bf16.mxu0 %v1153_v0 }
  0x6c   :  { %901 = vmatpush3.bf16.msra.mxu1 %v1256_v14 }
  0x6d   :  { %881 = vmatpush3.bf16.msra.mxu0 %v1256_v14  ;;  %902 = vmatprep.subr.bf16.mxu1 %v1153_v0 }
  0x6e   :  { %882 = vmatprep.subr.bf16.mxu0 %v1153_v0 }
  0x70   :  { %903 = vmatpush3.bf16.msra.mxu1 %v1260_v16 }
  0x71   :  { %883 = vmatpush3.bf16.msra.mxu0 %v1260_v16  ;;  %904 = vmatprep.subr.bf16.mxu1 %v1153_v0 }
  0x72   :  { %884 = vmatprep.subr.bf16.mxu0 %v1153_v0 }
  0x74   :  { %905 = vmatpush3.bf16.msra.mxu1 %v1264_v18 }
  0x75   :  { %885 = vmatpush3.bf16.msra.mxu0 %v1264_v18  ;;  %930 = vmatprep.subr.bf16.mxu1 %v1153_v0 }
  0x76   :  { %910 = vmatprep.subr.bf16.mxu0 %v1153_v0 }
 0x12a   :  { %v350_v29 = vpop.f32.mrb[0].mxu1 }
 0x12b   :  { %v844_v22 = vpop.f32.mrb[0].mxu0  ;;  %v868_v32 = vpop.f32.mrb[1].mxu1 }
 0x12c   :  { %v202_v24 = vpop.f32.mrb[1].mxu0  ;;  %v211_v26 = vadd.f32 %v844_v22, %v698_v23  ;;  %v353_v34 = vpop.f32.mrb[2].mxu1 }
 0x12d   :  { %v845_v25 = vpop.f32.mrb[2].mxu0  ;;  %v203_v30 = vadd.f32 %v698_v23, %v202_v24  ;;  %v869_v36 = vpop.f32.mrb[3].mxu1 }
 0x12e   :  { %v214_v27 = vadd.f32 %v845_v25, %v698_v23  ;;  %v205_v28 = vpop.f32.mrb[3].mxu0 }
 0x12f   :  { %v206_v31 = vadd.f32 %v698_v23, %v205_v28 }
 0x130   :  { %v727_v33 = vpack.c.bf16 %v214_v27, %v211_v26 }
 0x131   :  { %v722_v35 = vpack.c.bf16 %v206_v31, %v203_v30 }
 0x132   :  { %739 = vst [vmem:[#allocation2 + $0x8] sm:$0xff] %v727_v33  }
 0x133   :  { %723 = vst [vmem:[#allocation2] sm:$0xff] %v722_v35   ;;  %v848_v42 = vpop.f32.mrb[4].mxu0 }
 0x134   :  { %v227_v43 = vadd.f32 %v848_v42, %v698_v23  ;;  %v218_v44 = vpop.f32.mrb[5].mxu0 }
 0x135   :  { %v219_v45 = vadd.f32 %v698_v23, %v218_v44  ;;  %v849_v46 = vpop.f32.mrb[6].mxu0 }
 0x136   :  { %v230_v47 = vadd.f32 %v849_v46, %v698_v23  ;;  %v221_v48 = vpop.f32.mrb[7].mxu0 }
 0x137   :  { %v222_v49 = vadd.f32 %v698_v23, %v221_v48 }
 0x138   :  { %v737_v50 = vpack.c.bf16 %v230_v47, %v227_v43 }
 0x139   :  { %v732_v51 = vpack.c.bf16 %v222_v49, %v219_v45  ;;  %v406_v60 = vld [vmem:[#allocation2 + $0x8] sm:$0xff]  }
 0x13a   :  { %v266_v37 = vld [vmem:[#allocation2] sm:$0xff]   ;;  %741 = vst [vmem:[#allocation2 + $0x18] sm:$0xff] %v737_v50   ;;  %v448_v61 = vunpack.c.l.bf16 %v406_v60  ;;  %v494_v9 = vunpack.c.h.bf16 %v406_v60 }
 0x13b   :  { %v356_v38 = vunpack.c.l.bf16 %v266_v37  ;;  %740 = vst [vmem:[#allocation2 + $0x10] sm:$0xff] %v732_v51   ;;  %v402_v52 = vunpack.c.h.bf16 %v266_v37 }
 0x13d   :  { %v357_v39 = vadd.f32 %v356_v38, %v350_v29 }
 0x13f   :  { %1038 = vtanh.f32 %v357_v39 }
 0x141   :  { %v590_v34 = vld [vmem:[#allocation2 + $0x18] sm:$0xff]  }
 0x142   :  { %v498_v22 = vld [vmem:[#allocation2 + $0x10] sm:$0xff]   ;;  %v678_v39 = vunpack.c.h.bf16 %v590_v34 }
 0x143   :  { %v540_v23 = vunpack.c.l.bf16 %v498_v22 }
 0x149   :  { %v1039_v40 = vpop.eup %1038 }
 0x14a   :  { %v361_v41 = vpack.c.bf16 %v1039_v40, %v1039_v40 }
 0x14c   :  { %887 = vmatmul.mubr.bf16.vlgmr.msra.gmra.mrb[8].mxu0 %v361_v41 }
 0x14d   :  { %911 = vmatpush3.bf16.msra.mxu0 %v1237_v4  ;;  %926 = vmatprep.mubr.msk.bf16.mxu0 %vm1154_vm0, %v1153_v0 }
 0x14e   :  { %912 = vmatprep.subr.bf16.mxu0 %v1153_v0 }
 0x151   :  { %913 = vmatpush3.bf16.msra.mxu0 %v1240_v5 }
 0x152   :  { %914 = vmatprep.subr.bf16.mxu0 %v1153_v0 }
 0x155   :  { %915 = vmatpush3.bf16.msra.mxu0 %v1244_v7 }
 0x156   :  { %916 = vmatprep.subr.bf16.mxu0 %v1153_v0 }
 0x159   :  { %917 = vmatpush3.bf16.msra.mxu0 %v1248_v10 }
 0x15a   :  { %918 = vmatprep.subr.bf16.mxu0 %v1153_v0 }
 0x15d   :  { %919 = vmatpush3.bf16.msra.mxu0 %v1251_v12 }
 0x15e   :  { %920 = vmatprep.subr.bf16.mxu0 %v1153_v0 }
 0x161   :  { %921 = vmatpush3.bf16.msra.mxu0 %v1256_v14 }
 0x162   :  { %922 = vmatprep.subr.bf16.mxu0 %v1153_v0 }
 0x165   :  { %923 = vmatpush3.bf16.msra.mxu0 %v1260_v16 }
 0x166   :  { %924 = vmatprep.subr.bf16.mxu0 %v1153_v0 }
 0x169   :  { %925 = vmatpush3.bf16.msra.mxu0 %v1264_v18 }
 0x16a   :  { %950 = vmatprep.subr.bf16.mxu0 %v1153_v0 }
 0x21f   :  { %v396_v53 = vpop.f32.mrb[8].mxu0 }
 0x220   :  { %v403_v54 = vadd.f32 %v402_v52, %v396_v53  ;;  %v888_v55 = vpop.f32.mrb[9].mxu0 }
 0x221   :  { %v399_v56 = vpop.f32.mrb[10].mxu0 }
 0x222   :  { %1040 = vtanh.f32 %v403_v54  ;;  %v889_v57 = vpop.f32.mrb[11].mxu0 }
 0x22c   :  { %v1041_v58 = vpop.eup %1040 }
 0x22d   :  { %v407_v59 = vpack.c.bf16 %v1041_v58, %v1041_v58 }
 0x22f   :  { %907 = vmatmul.mubr.bf16.vlgmr.msra.gmra.mrb[4].mxu1 %v407_v59 }
 0x230   :  { %931 = vmatpush3.bf16.msra.mxu1 %v1237_v4  ;;  %946 = vmatprep.mubr.msk.bf16.mxu1 %vm1154_vm0, %v1153_v0 }
 0x231   :  { %932 = vmatprep.subr.bf16.mxu1 %v1153_v0 }
 0x234   :  { %933 = vmatpush3.bf16.msra.mxu1 %v1240_v5 }
 0x235   :  { %934 = vmatprep.subr.bf16.mxu1 %v1153_v0 }
 0x238   :  { %935 = vmatpush3.bf16.msra.mxu1 %v1244_v7 }
 0x239   :  { %936 = vmatprep.subr.bf16.mxu1 %v1153_v0 }
 0x23c   :  { %937 = vmatpush3.bf16.msra.mxu1 %v1248_v10 }
 0x23d   :  { %938 = vmatprep.subr.bf16.mxu1 %v1153_v0 }
 0x240   :  { %939 = vmatpush3.bf16.msra.mxu1 %v1251_v12 }
 0x241   :  { %940 = vmatprep.subr.bf16.mxu1 %v1153_v0 }
 0x244   :  { %941 = vmatpush3.bf16.msra.mxu1 %v1256_v14 }
 0x245   :  { %942 = vmatprep.subr.bf16.mxu1 %v1153_v0 }
 0x248   :  { %943 = vmatpush3.bf16.msra.mxu1 %v1260_v16 }
 0x249   :  { %944 = vmatprep.subr.bf16.mxu1 %v1153_v0 }
 0x24c   :  { %945 = vmatpush3.bf16.msra.mxu1 %v1264_v18 }
 0x24d   :  { %970 = vmatprep.subr.bf16.mxu1 %v1153_v0 }
 0x302   :  { %v442_v62 = vpop.f32.mrb[4].mxu1 }
 0x303   :  { %v449_v63 = vadd.f32 %v448_v61, %v442_v62  ;;  %v908_v1 = vpop.f32.mrb[5].mxu1 }
 0x304   :  { %v445_v2 = vpop.f32.mrb[6].mxu1 }
 0x305   :  { %1042 = vtanh.f32 %v449_v63  ;;  %v909_v3 = vpop.f32.mrb[7].mxu1 }
 0x30f   :  { %v1043_v6 = vpop.eup %1042 }
 0x310   :  { %v453_v8 = vpack.c.bf16 %v1043_v6, %v1043_v6 }
 0x312   :  { %927 = vmatmul.mubr.bf16.vlgmr.msra.gmra.mrb[12].mxu0 %v453_v8 }
 0x313   :  { %951 = vmatpush3.bf16.msra.mxu0 %v1237_v4  ;;  %966 = vmatprep.mubr.msk.bf16.mxu0 %vm1154_vm0, %v1153_v0 }
 0x314   :  { %952 = vmatprep.subr.bf16.mxu0 %v1153_v0 }
 0x317   :  { %953 = vmatpush3.bf16.msra.mxu0 %v1240_v5 }
 0x318   :  { %954 = vmatprep.subr.bf16.mxu0 %v1153_v0 }
 0x31b   :  { %955 = vmatpush3.bf16.msra.mxu0 %v1244_v7 }
 0x31c   :  { %956 = vmatprep.subr.bf16.mxu0 %v1153_v0 }
 0x31f   :  { %957 = vmatpush3.bf16.msra.mxu0 %v1248_v10 }
 0x320   :  { %958 = vmatprep.subr.bf16.mxu0 %v1153_v0 }
 0x323   :  { %959 = vmatpush3.bf16.msra.mxu0 %v1251_v12 }
 0x324   :  { %960 = vmatprep.subr.bf16.mxu0 %v1153_v0 }
 0x327   :  { %961 = vmatpush3.bf16.msra.mxu0 %v1256_v14 }
 0x328   :  { %962 = vmatprep.subr.bf16.mxu0 %v1153_v0 }
 0x32b   :  { %963 = vmatpush3.bf16.msra.mxu0 %v1260_v16 }
 0x32c   :  { %964 = vmatprep.subr.bf16.mxu0 %v1153_v0 }
 0x32f   :  { %965 = vmatpush3.bf16.msra.mxu0 %v1264_v18 }
 0x330   :  { %990 = vmatprep.subr.bf16.mxu0 %v1153_v0 }
 0x3e5   :  { %v488_v11 = vpop.f32.mrb[12].mxu0 }
 0x3e6   :  { %v495_v13 = vadd.f32 %v494_v9, %v488_v11  ;;  %v928_v15 = vpop.f32.mrb[13].mxu0 }
 0x3e7   :  { %v491_v17 = vpop.f32.mrb[14].mxu0 }
 0x3e8   :  { %1044 = vtanh.f32 %v495_v13  ;;  %v929_v19 = vpop.f32.mrb[15].mxu0 }
 0x3f2   :  { %v1045_v20 = vpop.eup %1044 }
 0x3f3   :  { %v499_v21 = vpack.c.bf16 %v1045_v20, %v1045_v20 }
 0x3f5   :  { %947 = vmatmul.mubr.bf16.vlgmr.msra.gmra.mrb[8].mxu1 %v499_v21 }
 0x3f6   :  { %971 = vmatpush3.bf16.msra.mxu1 %v1237_v4  ;;  %986 = vmatprep.mubr.msk.bf16.mxu1 %vm1154_vm0, %v1153_v0 }
 0x3f7   :  { %972 = vmatprep.subr.bf16.mxu1 %v1153_v0 }
 0x3fa   :  { %973 = vmatpush3.bf16.msra.mxu1 %v1240_v5 }
 0x3fb   :  { %974 = vmatprep.subr.bf16.mxu1 %v1153_v0 }
 0x3fe   :  { %975 = vmatpush3.bf16.msra.mxu1 %v1244_v7 }
 0x3ff   :  { %976 = vmatprep.subr.bf16.mxu1 %v1153_v0 }
 0x402   :  { %977 = vmatpush3.bf16.msra.mxu1 %v1248_v10 }
 0x403   :  { %978 = vmatprep.subr.bf16.mxu1 %v1153_v0 }
 0x406   :  { %979 = vmatpush3.bf16.msra.mxu1 %v1251_v12 }
 0x407   :  { %980 = vmatprep.subr.bf16.mxu1 %v1153_v0 }
 0x40a   :  { %981 = vmatpush3.bf16.msra.mxu1 %v1256_v14 }
 0x40b   :  { %982 = vmatprep.subr.bf16.mxu1 %v1153_v0 }
 0x40e   :  { %983 = vmatpush3.bf16.msra.mxu1 %v1260_v16 }
 0x40f   :  { %984 = vmatprep.subr.bf16.mxu1 %v1153_v0 }
 0x412   :  { %985 = vmatpush3.bf16.msra.mxu1 %v1264_v18 }
 0x4c8   :  { %v534_v24 = vpop.f32.mrb[8].mxu1 }
 0x4c9   :  { %v541_v25 = vadd.f32 %v540_v23, %v534_v24  ;;  %v948_v26 = vpop.f32.mrb[9].mxu1 }
 0x4ca   :  { %v537_v27 = vpop.f32.mrb[10].mxu1 }
 0x4cb   :  { %1046 = vtanh.f32 %v541_v25  ;;  %v949_v28 = vpop.f32.mrb[11].mxu1 }
 0x4d5   :  { %v1047_v29 = vpop.eup %1046 }
 0x4d6   :  { %v545_v30 = vpack.c.bf16 %v1047_v29, %v1047_v29 }
 0x4d8   :  { %967 = vmatmul.mubr.bf16.vlgmr.msra.gmra.mrb[16].mxu0 %v545_v30 }
 0x4d9   :  { %991 = vmatpush3.bf16.msra.mxu0 %v1237_v4  ;;  %1006 = vmatprep.mubr.msk.bf16.mxu0 %vm1154_vm0, %v1153_v0  ;;  %v586_v4 = vunpack.c.h.bf16 %v498_v22 }
 0x4da   :  { %992 = vmatprep.subr.bf16.mxu0 %v1153_v0 }
 0x4dd   :  { %993 = vmatpush3.bf16.msra.mxu0 %v1240_v5 }
 0x4de   :  { %994 = vmatprep.subr.bf16.mxu0 %v1153_v0 }
 0x4e1   :  { %995 = vmatpush3.bf16.msra.mxu0 %v1244_v7 }
 0x4e2   :  { %996 = vmatprep.subr.bf16.mxu0 %v1153_v0 }
 0x4e5   :  { %997 = vmatpush3.bf16.msra.mxu0 %v1248_v10 }
 0x4e6   :  { %998 = vmatprep.subr.bf16.mxu0 %v1153_v0 }
 0x4e9   :  { %999 = vmatpush3.bf16.msra.mxu0 %v1251_v12 }
 0x4ea   :  { %1000 = vmatprep.subr.bf16.mxu0 %v1153_v0 }
 0x4ed   :  { %1001 = vmatpush3.bf16.msra.mxu0 %v1256_v14  ;;  %v632_v14 = vunpack.c.l.bf16 %v590_v34 }
 0x4ee   :  { %1002 = vmatprep.subr.bf16.mxu0 %v1153_v0 }
 0x4f1   :  { %1003 = vmatpush3.bf16.msra.mxu0 %v1260_v16 }
 0x4f2   :  { %1004 = vmatprep.subr.bf16.mxu0 %v1153_v0 }
 0x4f5   :  { %1005 = vmatpush3.bf16.msra.mxu0 %v1264_v18 }
 0x5ab   :  { %v580_v5 = vpop.f32.mrb[16].mxu0 }
 0x5ac   :  { %v587_v7 = vadd.f32 %v586_v4, %v580_v5  ;;  %v968_v10 = vpop.f32.mrb[17].mxu0 }
 0x5ad   :  { %v583_v31 = vpop.f32.mrb[18].mxu0 }
 0x5ae   :  { %1048 = vtanh.f32 %v587_v7  ;;  %v969_v32 = vpop.f32.mrb[19].mxu0 }
 0x5b8   :  { %v1049_v12 = vpop.eup %1048 }
 0x5b9   :  { %v591_v33 = vpack.c.bf16 %v1049_v12, %v1049_v12 }
 0x5bb   :  { %987 = vmatmul.mubr.bf16.vlgmr.msra.gmra.mrb[12].mxu1 %v591_v33 }
 0x68e   :  { %v626_v35 = vpop.f32.mrb[12].mxu1 }
 0x68f   :  { %v633_v36 = vadd.f32 %v632_v14, %v626_v35  ;;  %v988_v37 = vpop.f32.mrb[13].mxu1 }
 0x690   :  { %v629_v16 = vpop.f32.mrb[14].mxu1 }
 0x691   :  { %1050 = vtanh.f32 %v633_v36  ;;  %v989_v0 = vpop.f32.mrb[15].mxu1 }
 0x69b   :  { %v1051_v38 = vpop.eup %1050 }
 0x69c   :  { %v637_v18 = vpack.c.bf16 %v1051_v38, %v1051_v38 }
 0x69e   :  { %1007 = vmatmul.mubr.bf16.vlgmr.msra.gmra.mrb[20].mxu0 %v637_v18 }
 0x771   :  { %v672_v40 = vpop.f32.mrb[20].mxu0 }
 0x772   :  { %v679_v41 = vadd.f32 %v678_v39, %v672_v40  ;;  %v1008_v42 = vpop.f32.mrb[21].mxu0 }
 0x773   :  { %v675_v43 = vpop.f32.mrb[22].mxu0 }
 0x774   :  { %1052 = vtanh.f32 %v679_v41  ;;  %v1009_v44 = vpop.f32.mrb[23].mxu0 }
 0x77e   :  { %v1053_v45 = vpop.eup %1052 }
 0x77f   :  { %681 = vst [vmem:[#allocation9] sm:$0xff] %v1053_v45 }
 0x780   :  { %1131 = shalt.err (!%p1128_p0)
}
 0x781   :  { %s1132_s30 = scalar_lea.hbm %s1413_s4, 128 }
 0x782   :  { %p1133_p1 = scmp.ne.s32.totalorder %s1413_s4, %s1132_s30  ;;  %p1136_p2 = scmp.lt.u32.totalorder %s1132_s30, %s1413_s4 }
 0x784   :  { %p1138_p3 = pnand %p1136_p2, %p1133_p1 }
 0x786   :  { %1141 = shalt.err (!%p1138_p3)
}
 0x787   :  { %691 = dma.vmem_to_hbm [thread:$0]  %s689_s26, 128, %s1413_s4, [#allocation5]  }
 0x788   :  { %1146 = dma.done.wait [#allocation5], 128  }
 0x789   :  { %1147 = vsyncadd [#allocation5], 4294967168 }
 0x78a   :  { %695 = vsyncpa [#allocation4], 1 }
 0x78b   :  { %696 = vsyncpa [#allocation7], 1 }
 0x78c   :  { %697 = vsyncpa [#allocation5], 1 }

</bundles_post_ra>
